<compile_context>
chip_gen: v7x
topology: tpu7x:2x2x1
jax: 0.10.0
libtpu: 0.0.40
codegen_flags: <defaults>
</compile_context>

<pallas_src>
import functools

import jax
import jax.numpy as jnp
from jax.experimental import pallas as pl
from jax.experimental.pallas import tpu as pltpu


def _round_up(x, m):
    return ((x + m - 1) // m) * m


def all_item_embed_kernel(packed_ref, et_ref, tab_ref, out_ref, *, etw_row):
    """One grid step = TR flattened (batch*seq) positions.

    packed_ref : (TR, 1) int32  -- item | part<<8 | corr<<16 | pos<<24 stacked-table row indices
    et_ref     : (TR, 1) f32    -- elapsed_time_norm
    tab_ref    : (Vpad, D) f32  -- stacked folded table [item | part | is_correct | sink | etw | pos]
    out_ref    : (TR, D)  f32   -- dim_model-wide output rows (exact, no lane padding in HBM)
    """
    TR = out_ref.shape[0]
    Vpad = tab_ref.shape[0]

    p = packed_ref[...]
    item = p & 0xFF
    part = (p >> 8) & 0xFF
    corr = (p >> 16) & 0xFF
    posr = (p >> 24) & 0xFF

    lanes = jax.lax.broadcasted_iota(jnp.int32, (TR, Vpad), 1)
    # Merged one-hot: the four index fields hit disjoint row ranges of the stacked table, so a
    # single well-shaped K=Vpad MXU matmul yields item+part+correct+positional(+bias) directly.
    hit = (lanes == item) | (lanes == part) | (lanes == corr) | (lanes == posr)
    # Elapsed-time term rides the same matmul: its dedicated column carries the raw elapsed value.
    oh = jnp.where(lanes == etw_row, et_ref[...], hit.astype(jnp.float32))

    out_ref[...] = jnp.dot(oh, tab_ref[...], preferred_element_type=jnp.float32)


def fold_params(params):
    """One-time precompute: fold aggregate_embeds into every feature path, stack into one table."""
    item_tab, part_tab, corr_tab = params["item_tab"], params["part_tab"], params["corr_tab"]
    et_w, pos, agg_w, agg_b = params["et_w"], params["pos"], params["agg_w"], params["agg_b"]
    d_item, d_part, d_corr = item_tab.shape[1], part_tab.shape[1], corr_tab.shape[1]
    d_et, d_pos = et_w.shape[1], pos.shape[1]
    dim_model = agg_w.shape[1]
    max_seq_len = pos.shape[0]

    o = 0
    w_item = agg_w[o:o + d_item]; o += d_item
    w_part = agg_w[o:o + d_part]; o += d_part
    w_corr = agg_w[o:o + d_corr]; o += d_corr
    w_et = agg_w[o:o + d_et]; o += d_et
    w_pos = agg_w[o:o + d_pos]

    item_p = item_tab @ w_item                      # (Vi, dim_model)
    part_p = part_tab @ w_part                      # (Vp, dim_model)
    corr_p = corr_tab @ w_corr                      # (Vc, dim_model)
    et_p = et_w @ w_et                              # (1, dim_model)
    pos_p = pos @ w_pos + agg_b                     # (max_seq_len, dim_model), bias folded here

    vi, vp, vc = item_p.shape[0], part_p.shape[0], corr_p.shape[0]
    v_tot = vi + vp + vc
    sink = v_tot                    # reserved all-zero row (explicitly reserved -> no collision)
    etw_row = v_tot + 1             # elapsed-time linear row
    pos_base = v_tot + 2            # positional rows [pos_base, pos_base + max_seq_len)
    rows = pos_base + max_seq_len
    # 4x8-bit id packing needs every row index < 256.
    # TODO(synk): for larger vocabularies (>256 stacked rows) switch to a scalar-prefetch / DMA
    # gather of table rows instead of the stacked one-hot matmul.
    assert rows <= 256, "stacked table too large for 4x8-bit id packing"
    v_pad = max(128, _round_up(rows, 128))

    stacked = jnp.zeros((v_pad, dim_model), jnp.float32)
    stacked = stacked.at[:vi].set(item_p)
    stacked = stacked.at[vi:vi + vp].set(part_p)
    stacked = stacked.at[vi + vp:v_tot].set(corr_p)
    stacked = stacked.at[etw_row].set(et_p[0])
    stacked = stacked.at[pos_base:pos_base + max_seq_len].set(pos_p)
    # Row `sink` stays all-zero: out-of-range ids silently map to zero (documented divergence).

    return dict(stacked=stacked, offsets=(0, vi, vi + vp), sizes=(vi, vp, vc),
                sink=sink, etw_row=etw_row, pos_base=pos_base,
                dim_model=dim_model, v_pad=v_pad, max_seq_len=max_seq_len)


def all_item_input_embedding(batch, text_embedding_batch, folded):
    """Forward pass. `batch` holds (B, S) arrays; text_embedding_batch is unused because the
    configured experiment_type is not 'D' (same branch as the torch forward)."""
    del text_embedding_batch  # not 'D' experiment -> item_id embedding used as-is

    item = batch["item_id"].astype(jnp.int32)
    part = batch["part_id"].astype(jnp.int32)
    corr = batch["is_correct"].astype(jnp.int32)
    elapsed = batch["elapsed_time_norm"].astype(jnp.float32)
    B, S = item.shape
    N = B * S

    dim_model = folded["dim_model"]
    v_pad = folded["v_pad"]
    sink = folded["sink"]
    offs, sizes = folded["offsets"], folded["sizes"]

    def to_row(ids, off, size):
        ok = (ids >= 0) & (ids < size)
        return jnp.where(ok, ids + off, sink)

    item_r = to_row(item, offs[0], sizes[0])
    part_r = to_row(part, offs[1], sizes[1])
    corr_r = to_row(corr, offs[2], sizes[2])
    pos_r = folded["pos_base"] + jax.lax.broadcasted_iota(jnp.int32, (B, S), 1)

    # 4x8-bit pack: one int32 id stream instead of three (+ positional index) -> 2 per-row DMAs.
    packed = (item_r | (part_r << 8) | (corr_r << 16) | (pos_r << 24)).reshape(N, 1)
    et = elapsed.reshape(N, 1)

    # Row tile: hundreds of rows per grid step (review opt #1); tiny demo -> single step.
    TR = 512 if N >= 512 else _round_up(N, 8)
    N_pad = _round_up(N, TR)
    # TODO(synk): on v7x, prefer a TR that yields an even grid of >= 8 steps so both TensorCores
    # each get several pipelined steps; irrelevant at demo shapes.
    if N_pad != N:
        fill = sink | (sink << 8) | (sink << 16) | (sink << 24)   # all-zero contributions
        packed = jnp.concatenate(
            [packed, jnp.full((N_pad - N, 1), fill, jnp.int32)], axis=0)
        et = jnp.concatenate([et, jnp.zeros((N_pad - N, 1), jnp.float32)], axis=0)

    out = pl.pallas_call(
        functools.partial(all_item_embed_kernel, etw_row=folded["etw_row"]),
        out_shape=jax.ShapeDtypeStruct((N_pad, dim_model), jnp.float32),
        grid=(N_pad // TR,),
        in_specs=[
            pl.BlockSpec((TR, 1), lambda g: (g, 0)),
            pl.BlockSpec((TR, 1), lambda g: (g, 0)),
            pl.BlockSpec((v_pad, dim_model), lambda g: (0, 0)),   # table: VMEM-resident
        ],
        out_specs=pl.BlockSpec((TR, dim_model), lambda g: (g, 0)),
        compiler_params=pltpu.CompilerParams(
            dimension_semantics=("parallel",),
            vmem_limit_bytes=32 * 1024 * 1024,
        ),
    )(packed, et, folded["stacked"])

    if N_pad != N:
        out = out[:N]
    return out.reshape(B, S, dim_model)   # contiguous -> metadata-only reshape, no extra HBM pass


def reference_forward(batch, params):
    item_e = params["item_tab"][batch["item_id"]]
    part_e = params["part_tab"][batch["part_id"]]
    corr_e = params["corr_tab"][batch["is_correct"]]
    et_e = batch["elapsed_time_norm"][..., None] * params["et_w"][0]
    B = item_e.shape[0]
    pos_e = jnp.broadcast_to(params["pos"][None], (B,) + params["pos"].shape)
    all_e = jnp.concatenate([item_e, part_e, corr_e, et_e, pos_e], axis=-1)
    return all_e @ params["agg_w"] + params["agg_b"][0]


def make_params(key, *, max_item_id, max_part_id, max_seq_len,
                d_item, d_part, d_corr, d_et, d_pos, dim_model):
    ks = jax.random.split(key, 8)
    V_item = max_item_id + 1
    V_part = max_part_id + 1

    item_tab = jax.random.normal(ks[0], (V_item, d_item), jnp.float32)
    item_tab = item_tab.at[0].set(0.0)          # padding_idx = 0
    part_tab = jax.random.normal(ks[1], (V_part, d_part), jnp.float32)
    part_tab = part_tab.at[0].set(0.0)          # padding_idx = 0
    corr_tab = jax.random.normal(ks[2], (3, d_corr), jnp.float32)
    corr_tab = corr_tab.at[0].set(0.0)          # padding_idx = 0

    et_w = jax.random.normal(ks[3], (1, d_et), jnp.float32)   # Linear(1, d_et, bias=False).weight^T

    a_pos = (6.0 / (max_seq_len + d_pos)) ** 0.5              # xavier_uniform
    pos = jax.random.uniform(ks[4], (max_seq_len, d_pos), jnp.float32, -a_pos, a_pos)

    total_dim = d_item + d_part + d_corr + d_et + d_pos
    a_w = (1.0 / total_dim) ** 0.5
    agg_w = jax.random.uniform(ks[5], (total_dim, dim_model), jnp.float32, -a_w, a_w)
    agg_b = jax.random.uniform(ks[6], (1, dim_model), jnp.float32, -a_w, a_w)

    return dict(item_tab=item_tab, part_tab=part_tab, corr_tab=corr_tab,
                et_w=et_w, pos=pos, agg_w=agg_w, agg_b=agg_b)


if __name__ == "__main__":
    B, S = 2, 8                    # max_seq_len = 8
    max_item_id, max_part_id = 50, 7
    d_item = d_part = d_corr = d_et = d_pos = 8
    dim_model = 32

    key = jax.random.PRNGKey(0)
    k_p, k_i, k_pt, k_c, k_e, k_t = jax.random.split(key, 6)

    params = make_params(k_p, max_item_id=max_item_id, max_part_id=max_part_id,
                         max_seq_len=S, d_item=d_item, d_part=d_part, d_corr=d_corr,
                         d_et=d_et, d_pos=d_pos, dim_model=dim_model)

    batch = {
        "item_id": jax.random.randint(k_i, (B, S), 0, max_item_id + 1, jnp.int32),
        "part_id": jax.random.randint(k_pt, (B, S), 0, max_part_id + 1, jnp.int32),
        "is_correct": jax.random.randint(k_c, (B, S), 0, 3, jnp.int32),
        "elapsed_time_norm": jax.random.normal(k_e, (B, S), jnp.float32),
    }
    # Unused (experiment_type != 'D'), kept for signature fidelity.
    text_embedding_batch = jax.random.normal(k_t, (B, S, d_item), jnp.float32)

    folded = fold_params(params)   # one-time precompute (fold agg_w/agg_b into every feature)

    out = all_item_input_embedding(batch, text_embedding_batch, folded)
    out = jax.block_until_ready(out)

    ref = reference_forward(batch, params)
    assert out.shape == (B, S, dim_model)
    assert jnp.allclose(out, ref, atol=2e-4, rtol=2e-4), "mismatch vs JAX reference"
    print("KERNEL_OK")
</pallas_src>

<mosaic_0001>
module attributes {stable_mosaic.version = 11 : i64} {
  func.func @all_item_embed_kernel(%arg0: i32, %arg1: memref<16x1xi32, #tpu.memory_space<vmem>>, %arg2: memref<16x1xf32, #tpu.memory_space<vmem>>, %arg3: memref<128x32xf32, #tpu.memory_space<vmem>>, %arg4: memref<16x32xf32, #tpu.memory_space<vmem>>) attributes {dimension_semantics = [#tpu.dimension_semantics<parallel>], iteration_bounds = array<i64: 1>, scalar_prefetch = 0 : i64, scratch_operands = 0 : i64, tpu.core_type = #tpu.core_type<tc>, window_params = [{transform_indices = @transform_0, window_bounds = array<i64: 16, 1>}, {transform_indices = @transform_1, window_bounds = array<i64: 16, 1>}, {pipeline_mode = #tpu.pipeline_mode<synchronous>, transform_indices = @transform_2, window_bounds = array<i64: 128, 32>}, {transform_indices = @transform_3, window_bounds = array<i64: 16, 32>}]} {
    %c0 = arith.constant 0 : index
    %c0_0 = arith.constant 0 : index
    %0 = vector.load %arg1[%c0, %c0_0] : memref<16x1xi32, #tpu.memory_space<vmem>>, vector<16x1xi32>
    %c255_i32 = arith.constant 255 : i32
    %1 = vector.broadcast %c255_i32 : i32 to vector<16x1xi32>
    %2 = arith.andi %0, %1 : vector<16x1xi32>
    %c8_i32 = arith.constant 8 : i32
    %3 = vector.broadcast %c8_i32 : i32 to vector<16x1xi32>
    %4 = arith.shrsi %0, %3 : vector<16x1xi32>
    %c255_i32_1 = arith.constant 255 : i32
    %5 = vector.broadcast %c255_i32_1 : i32 to vector<16x1xi32>
    %6 = arith.andi %4, %5 : vector<16x1xi32>
    %c16_i32 = arith.constant 16 : i32
    %7 = vector.broadcast %c16_i32 : i32 to vector<16x1xi32>
    %8 = arith.shrsi %0, %7 : vector<16x1xi32>
    %c255_i32_2 = arith.constant 255 : i32
    %9 = vector.broadcast %c255_i32_2 : i32 to vector<16x1xi32>
    %10 = arith.andi %8, %9 : vector<16x1xi32>
    %c24_i32 = arith.constant 24 : i32
    %11 = vector.broadcast %c24_i32 : i32 to vector<16x1xi32>
    %12 = arith.shrsi %0, %11 : vector<16x1xi32>
    %c255_i32_3 = arith.constant 255 : i32
    %13 = vector.broadcast %c255_i32_3 : i32 to vector<16x1xi32>
    %14 = arith.andi %12, %13 : vector<16x1xi32>
    %15 = tpu.iota {dimensions = array<i32: 1>} : vector<16x128xi32>
    %16 = vector.broadcast %2 : vector<16x1xi32> to vector<16x128xi32>
    %17 = arith.cmpi eq, %15, %16 : vector<16x128xi32>
    %18 = vector.broadcast %6 : vector<16x1xi32> to vector<16x128xi32>
    %19 = arith.cmpi eq, %15, %18 : vector<16x128xi32>
    %20 = arith.ori %17, %19 : vector<16x128xi1>
    %21 = vector.broadcast %10 : vector<16x1xi32> to vector<16x128xi32>
    %22 = arith.cmpi eq, %15, %21 : vector<16x128xi32>
    %23 = arith.ori %20, %22 : vector<16x128xi1>
    %24 = vector.broadcast %14 : vector<16x1xi32> to vector<16x128xi32>
    %25 = arith.cmpi eq, %15, %24 : vector<16x128xi32>
    %26 = arith.ori %23, %25 : vector<16x128xi1>
    %c63_i32 = arith.constant 63 : i32
    %27 = vector.broadcast %c63_i32 : i32 to vector<16x128xi32>
    %28 = arith.cmpi eq, %15, %27 : vector<16x128xi32>
    %c0_4 = arith.constant 0 : index
    %c0_5 = arith.constant 0 : index
    %29 = vector.load %arg2[%c0_4, %c0_5] : memref<16x1xf32, #tpu.memory_space<vmem>>, vector<16x1xf32>
    %30 = arith.extui %26 : vector<16x128xi1> to vector<16x128xi32>
    %31 = arith.sitofp %30 : vector<16x128xi32> to vector<16x128xf32>
    %32 = vector.shape_cast %29 : vector<16x1xf32> to vector<16x1xf32>
    %33 = vector.broadcast %32 : vector<16x1xf32> to vector<16x128xf32>
    %34 = arith.select %28, %33, %31 : vector<16x128xi1>, vector<16x128xf32>
    %c0_6 = arith.constant 0 : index
    %c0_7 = arith.constant 0 : index
    %35 = vector.load %arg3[%c0_6, %c0_7] : memref<128x32xf32, #tpu.memory_space<vmem>>, vector<128x32xf32>
    %cst = arith.constant dense<0.000000e+00> : vector<16x32xf32>
    %36 = tpu.matmul %34, %35, %cst {dimension_numbers = #tpu.dot_dimension_numbers<[1], [0], [0], [1], [0, 0, 1, 1], [], []>} : vector<16x128xf32>, vector<128x32xf32>, vector<16x32xf32> -> vector<16x32xf32>
    %c0_8 = arith.constant 0 : index
    %c0_9 = arith.constant 0 : index
    %37 = vector.load %arg4[%c0_8, %c0_9] : memref<16x32xf32, #tpu.memory_space<vmem>>, vector<16x32xf32>
    tpu.vector_store %arg4[%c0_8, %c0_9], %36 {strides = array<i32>} : memref<16x32xf32, #tpu.memory_space<vmem>>, vector<16x32xf32>,
    return
  }
  func.func @transform_0(%arg0: i32) -> (i32, i32) {
    %c0_i32 = arith.constant 0 : i32
    %c0_i32_0 = arith.constant 0 : i32
    return %arg0, %c0_i32 : i32, i32
  }
  func.func @transform_1(%arg0: i32) -> (i32, i32) {
    %c0_i32 = arith.constant 0 : i32
    %c0_i32_0 = arith.constant 0 : i32
    return %arg0, %c0_i32 : i32, i32
  }
  func.func @transform_2(%arg0: i32) -> (i32, i32) {
    %c0_i32 = arith.constant 0 : i32
    %c0_i32_0 = arith.constant 0 : i32
    %c0_i32_1 = arith.constant 0 : i32
    return %c0_i32, %c0_i32_0 : i32, i32
  }
  func.func @transform_3(%arg0: i32) -> (i32, i32) {
    %c0_i32 = arith.constant 0 : i32
    %c0_i32_0 = arith.constant 0 : i32
    return %arg0, %c0_i32 : i32, i32
  }
}

</mosaic_0001>

<bundles_post_ra>
// kernel: tpu_custom_call.1
= control target key start
LH: loop header
LB: loop body
LE: loop exit
PB: predicated region body
PF: predicated region fallthrough
CT: control target
= control target key end

     0   :  { %v325_v2 = vmov 0   ;;  %s422_s0 = inlined_call_operand.vmem [shape: s32[16,1], index: 0, kind: input, shape index: {}]   ;;  %s423_s1 = inlined_call_operand.vmem [shape: f32[16,1], index: 1, kind: input, shape index: {}]   ;;  %s424_s2 = inlined_call_operand.vmem [shape: f32[128,32], index: 2, kind: input, shape index: {}]   ;;  %s425_s3 = inlined_call_operand.hbm [shape: f32[16,32], index: 3, kind: output, shape index: {}]  }
   0x1   :  { %v16_v0 = vld [vmem:[%s422_s0 + $0x8] sm:$0xff]  ;;  %v15_v1 = vld [vmem:[%s422_s0] sm:$0xff]  ;;  %295 = vset.pattern.permute.xlu1 %v325_v2  ;;  %294 = vset.pattern.permute.xlu0 %v325_v2  ;;  %v92_v10 = vld [vmem:[%s424_s2 + $0x10] sm:$0xff] }
   0x2   :  { %v18_v3 = vand.u32 255, %v16_v0  ;;  %v17_v4 = vand.u32 255, %v15_v1  ;;  %v20_v5 = vshra.s32 %v16_v0, 8  ;;  %v19_v6 = vshra.s32 %v15_v1, 8  ;;  %v90_v7 = vld [vmem:[%s424_s2] sm:$0xff]  ;;  %v91_v9 = vld [vmem:[%s424_s2 + $0x8] sm:$0xff] }
   0x3   :  { %v24_v8 = vshra.s32 %v16_v0, 16  ;;  %v23_v13 = vshra.s32 %v15_v1, 16  ;;  %v257_v14 = vpack.c.bf16 %v91_v9, %v90_v7  ;;  %v93_v15 = vld [vmem:[%s424_s2 + $0x18] sm:$0xff] }
   0x4   :  { %37 = vperm.xlu1 %295, %v18_v3   ;;  %34 = vperm.xlu0 %294, %v17_v4   ;;  %v22_v11 = vand.u32 255, %v20_v5  ;;  %v21_v12 = vand.u32 255, %v19_v6  ;;  %v261_v16 = vpack.c.bf16 %v93_v15, %v92_v10 }
   0x5   :  { %8 = vsyncpa [#allocation3], 0  ;;  %258 = vmatprep.subr.bf16.mxu0 %v257_v14  ;;  %v94_v17 = vld [vmem:[%s424_s2 + $0x20] sm:$0xff]  ;;  %v95_v18 = vld [vmem:[%s424_s2 + $0x28] sm:$0xff]  ;;  %v26_v19 = vand.u32 255, %v24_v8  ;;  %v25_v20 = vand.u32 255, %v23_v13  ;;  %v31_v44 = vlaneseq }
   0x6   :  { %260 = vmatpush3.bf16.msra.mxu0 %v257_v14  ;;  %v265_v21 = vpack.c.bf16 %v95_v18, %v94_v17  ;;  %v96_v22 = vld [vmem:[%s424_s2 + $0x30] sm:$0xff]  ;;  %v97_v23 = vld [vmem:[%s424_s2 + $0x38] sm:$0xff]  ;;  %v201_v24 = vshrl.u32 %v16_v0, 24  ;;  %v200_v25 = vshrl.u32 %v15_v1, 24  ;;  %v72_v26 = vld [vmem:[%s423_s1] sm:$0xff]  ;;  %v326_v55 = vmov 0.0  }
   0x7   :  { %262 = vmatprep.subr.bf16.mxu0 %v261_v16  ;;  %v73_v27 = vld [vmem:[%s423_s1 + $0x8] sm:$0xff]  ;;  %v269_v28 = vpack.c.bf16 %v97_v23, %v96_v22  ;;  %v98_v29 = vld [vmem:[%s424_s2 + $0x40] sm:$0xff]  ;;  %v100_v33 = vld [vmem:[%s424_s2 + $0x50] sm:$0xff]  ;;  %v32_v47 = vand.u32 127, %v31_v44  ;;  %vm181_vm15 = vcmask 261120  }
   0x8   :  { %45 = vperm.xlu1 %295, %v22_v11   ;;  %42 = vperm.xlu0 %294, %v21_v12   ;;  %v99_v30 = vld [vmem:[%s424_s2 + $0x48] sm:$0xff]  ;;  %v296_v31 = vpack.i.bf16 %v73_v27, %v72_v26  ;;  %v101_v34 = vld [vmem:[%s424_s2 + $0x58] sm:$0xff]  ;;  %v102_v36 = vld [vmem:[%s424_s2 + $0x60] sm:$0xff] }
   0x9   :  { %v273_v32 = vpack.c.bf16 %v99_v30, %v98_v29  ;;  %v277_v35 = vpack.c.bf16 %v101_v34, %v100_v33  ;;  %v103_v37 = vld [vmem:[%s424_s2 + $0x68] sm:$0xff]  ;;  %v104_v39 = vld [vmem:[%s424_s2 + $0x70] sm:$0xff]  ;;  %v105_v40 = vld [vmem:[%s424_s2 + $0x78] sm:$0xff]  ;;  %vm71_vm14 = vcmp.eq.s32.totalorder %v32_v47, 63  ;;  %s327_s2 = smov [#allocation2]  }
   0xa   :  { %264 = vmatpush3.bf16.msra.mxu0 %v261_v16  ;;  %v281_v38 = vpack.c.bf16 %v103_v37, %v102_v36  ;;  %v285_v41 = vpack.c.bf16 %v105_v40, %v104_v39  ;;  %s189_s22 = sshll.u32 %s327_s2, 4  ;;  %s190_s22 = int_to_ptr.vmem [resolvable:$true] %s189_s22 }
   0xb   :  { %266 = vmatprep.subr.bf16.mxu0 %v265_v21  ;;  %s301_s23 = scalar_lea.vmem %s190_s22, 256  ;;  %p306_p1 = scmp.lt.s32.totalorder %s190_s22, %s190_s22 }
   0xc   :  { %55 = vperm.xlu1 %295, %v26_v19   ;;  %52 = vperm.xlu0 %294, %v25_v20   ;;  %p302_p0 = scmp.ne.s32.totalorder %s190_s22, %s301_s23  ;;  %p307_p2 = scmp.lt.s32.totalorder %s301_s23, %s301_s23 }
   0xe   :  { %268 = vmatpush3.bf16.msra.mxu0 %v265_v21  ;;  %p308_p3 = por %p307_p2, %p306_p1 }
   0xf   :  { %270 = vmatprep.subr.bf16.mxu0 %v269_v28 }
  0x10   :  { %65 = vperm.xlu1 %295, %v201_v24   ;;  %62 = vperm.xlu0 %294, %v200_v25   ;;  %p309_p4 = pnand %p308_p3, %p302_p0 }
  0x12   :  { %272 = vmatpush3.bf16.msra.mxu0 %v269_v28 }
  0x13   :  { %274 = vmatprep.subr.bf16.mxu0 %v273_v32 }
  0x14   :  { %297 = vperm.xlu0 %294, %v296_v31  }
  0x16   :  { %276 = vmatpush3.bf16.msra.mxu0 %v273_v32 }
  0x17   :  { %278 = vmatprep.subr.bf16.mxu0 %v277_v35 }
  0x1a   :  { %280 = vmatpush3.bf16.msra.mxu0 %v277_v35 }
  0x1b   :  { %282 = vmatprep.subr.bf16.mxu0 %v281_v38 }
  0x1e   :  { %284 = vmatpush3.bf16.msra.mxu0 %v281_v38 }
  0x1f   :  { %286 = vmatprep.subr.bf16.mxu0 %v285_v41 }
  0x22   :  { %288 = vmatpush3.bf16.msra.mxu0 %v285_v41 }
  0x83   :  { %v38_v42 = vpop.permute.xlu1 %37  ;;  %v35_v43 = vpop.permute.xlu0 %34 }
  0x84   :  { %vm40_vm0 = vcmp.eq.s32.totalorder %v32_v47, %v38_v42  ;;  %vm39_vm4 = vcmp.eq.s32.totalorder %v32_v47, %v35_v43 }
  0x87   :  { %v46_v45 = vpop.permute.xlu1 %45  ;;  %v43_v46 = vpop.permute.xlu0 %42 }
  0x88   :  { %vm48_vm1 = vcmp.eq.s32.totalorder %v32_v47, %v46_v45  ;;  %vm47_vm2 = vcmp.eq.s32.totalorder %v32_v47, %v43_v46 }
  0x89   :  { %vm50_vm5 = vmor %vm40_vm0, %vm48_vm1 }
  0x8a   :  { %vm49_vm7 = vmor %vm39_vm4, %vm47_vm2 }
  0x8b   :  { %v56_v48 = vpop.permute.xlu1 %55  ;;  %v53_v49 = vpop.permute.xlu0 %52 }
  0x8c   :  { %vm58_vm3 = vcmp.eq.s32.totalorder %v32_v47, %v56_v48  ;;  %vm57_vm6 = vcmp.eq.s32.totalorder %v32_v47, %v53_v49 }
  0x8d   :  { %vm60_vm8 = vmor %vm50_vm5, %vm58_vm3 }
  0x8e   :  { %vm59_vm9 = vmor %vm49_vm7, %vm57_vm6 }
  0x8f   :  { %v66_v50 = vpop.permute.xlu1 %65  ;;  %v63_v51 = vpop.permute.xlu0 %62 }
  0x90   :  { %vm68_vm10 = vcmp.eq.s32.totalorder %v32_v47, %v66_v50  ;;  %vm67_vm11 = vcmp.eq.s32.totalorder %v32_v47, %v63_v51 }
  0x91   :  { %vm70_vm12 = vmor %vm60_vm8, %vm68_vm10 }
  0x92   :  { %vm69_vm13 = vmor %vm59_vm9, %vm67_vm11  ;;  %v203_v56 = vsel %vm70_vm12, 1.0, %v326_v55 }
  0x93   :  { %v298_v52 = vpop.permute.xlu0 %297  ;;  %v202_v57 = vsel %vm69_vm13, 1.0, %v326_v55 }
  0x94   :  { %v300_v53 = vunpack.i.h.bf16 %v298_v52  ;;  %v299_v54 = vunpack.i.l.bf16 %v298_v52 }
  0x96   :  { %v88_v58 = vsel %vm71_vm14, %v299_v54, %v202_v57  ;;  %v89_v59 = vsel %vm71_vm14, %v300_v53, %v203_v56 }
  0x97   :  { %254 = vmatprep.mubr.f32.mxu0 %v88_v58 }
  0x98   :  { %255 = vmatmul.mubr.f32.vlgmr.msra.gmra.mrb[0].mxu0 %v89_v59 }
 0x16b   :  { %v256_v60 = vpop.f32.mrb[0].mxu0 }
 0x16c   :  { %183 = vst.msk [vmem:[#allocation2 + $0x8] sm:$0xff] %vm181_vm15, %v256_v60  ;;  %v172_v61 = vpop.f32.mrb[1].mxu0 }
 0x16d   :  { %182 = vst.msk [vmem:[#allocation2] sm:$0xff] %vm181_vm15, %v172_v61 }
 0x16e   :  { %312 = shalt.err (!%p309_p4)
}
 0x16f   :  { %s313_s26 = scalar_lea.hbm %s425_s3, 256 }
 0x170   :  { %p314_p5 = scmp.ne.s32.totalorder %s425_s3, %s313_s26  ;;  %p317_p6 = scmp.lt.u32.totalorder %s313_s26, %s425_s3 }
 0x172   :  { %p319_p7 = pnand %p317_p6, %p314_p5 }
 0x174   :  { %322 = shalt.err (!%p319_p7)
}
 0x175   :  { %s328_s4 = smov 128   ;;  %s329_s5 = smov 8  }
 0x176   :  { %195 = dma.vmem_to_hbm [thread:$0]  %s190_s22, 256, %s425_s3, [#allocation3], %s328_s4, %s328_s4, %s329_s5  }
 0x177   :  { %323 = dma.done.wait [#allocation3], 256  }
 0x178   :  { %324 = vsyncadd [#allocation3], 4294967040 }
 0x179   :  { %199 = vsyncpa [#allocation3], 1 }

</bundles_post_ra>
